<compile_context>
chip_gen: v7x
topology: tpu7x:2x2x1
jax: 0.10.0
libtpu: 0.0.40
codegen_flags: <defaults>
</compile_context>

<pallas_src>
import numpy as np
import jax
import jax.numpy as jnp
from jax.experimental import pallas as pl
from jax.experimental.pallas import tpu as pltpu

# ---------------- configuration (small, consistent with the module) -------------
B = 2            # batch
IN_CHANNELS = 4  # in_channels
H = W = 16       # spatial
POOL_DIM = 2     # pool_dim
HIDDEN = 32      # hidden_sizes
HIDDEN2 = int(HIDDEN * 0.5)
OUT_CHANNELS = 10

LANE = 128
SUBLANE = 8


def _round_up(x, m):
    return (x + m - 1) // m * m


# ---------------------------------- kernel --------------------------------------
def exit_mlp_kernel(x_ref, w1_ref, b1_ref, w2_ref, b2_ref, w3_ref, b3_ref, o_ref):
    """Three MXU matmuls + VPU ReLUs on one [TILE_B, C*H*W] batch tile.

    Pool + Flatten are pre-folded into w1_ref (see prepare_params), so the kernel
    never touches the XLU and its K dimension is a clean multiple of 128.
    """
    h1 = jnp.dot(x_ref[...], w1_ref[...], preferred_element_type=jnp.float32) + b1_ref[...]
    h1 = jnp.maximum(h1, 0.0)
    h2 = jnp.dot(h1, w2_ref[...], preferred_element_type=jnp.float32) + b2_ref[...]
    h2 = jnp.maximum(h2, 0.0)
    o_ref[...] = (jnp.dot(h2, w3_ref[...], preferred_element_type=jnp.float32)
                  + b3_ref[...]).astype(o_ref.dtype)


# ------------------------------ param preparation -------------------------------
def prepare_params(params, *, in_channels=IN_CHANNELS, pool_dim=POOL_DIM,
                   height=H, width=W):
    """One-time parameter prep (do NOT call per forward).

    Folds AdaptiveAvgPool2d(P) + Flatten into the first weight matrix using the
    PyTorch NCHW flatten order (c, h, w), and pads the final linear's output dim
    to a multiple of 128 lanes. Assumes H, W divisible by pool_dim (exact
    AdaptiveAvgPool2d semantics in that case).
    """
    w1, b1, w2, b2, w3, b3 = params
    P = pool_dim
    kh, kw = height // P, width // P

    # flat (c, h, w) -> torch flatten index of pooled [C, P, P]: c*P*P + (h//kh)*P + (w//kw)
    c = np.arange(in_channels)[:, None, None]
    h = np.arange(height)[None, :, None]
    w = np.arange(width)[None, None, :]
    idx = (c * P * P + (h // kh) * P + (w // kw)).reshape(-1)          # [C*H*W]
    w1_eff = jnp.asarray(w1)[idx, :] / float(kh * kw)                  # [C*H*W, HIDDEN]

    out_dim = w3.shape[-1]
    out_pad = _round_up(out_dim, LANE)
    w3_p = jnp.zeros((w3.shape[0], out_pad), w3.dtype).at[:, :out_dim].set(w3)
    b3_p = jnp.zeros((1, out_pad), b3.dtype).at[:, :out_dim].set(b3.reshape(1, -1))

    return (w1_eff, b1.reshape(1, -1), w2, b2.reshape(1, -1), w3_p, b3_p, out_dim)


# ---------------------------------- wrapper --------------------------------------
def exit_block_forward(x, prepared, *, tile_b=128):
    """x: [B, C, H, W] float32 (NCHW). Returns [B, OUT_CHANNELS]."""
    w1_eff, b1, w2, b2, w3, b3, out_dim = prepared
    bsz = x.shape[0]
    k = w1_eff.shape[0]
    hidden = w2.shape[0]
    hidden2 = w2.shape[1]
    out_pad = w3.shape[1]

    # NCHW flatten order is (c, h, w): pure reshape, lane-dense, no transpose.
    x_flat = x.reshape(bsz, k)

    # Batch tile: at least one sublane-aligned row tile; pad batch up to a multiple.
    tb = min(tile_b, _round_up(bsz, SUBLANE))
    bp = _round_up(bsz, tb)
    if bp != bsz:
        x_flat = jnp.pad(x_flat, ((0, bp - bsz), (0, 0)))
    grid = (bp // tb,)

    flops = 2 * bp * (k * hidden + hidden * hidden2 + hidden2 * out_pad)
    bytes_accessed = 4 * (bp * k + k * hidden + hidden * hidden2
                          + hidden2 * out_pad + bp * out_pad)

    out_p = pl.pallas_call(
        exit_mlp_kernel,
        out_shape=jax.ShapeDtypeStruct((bp, out_pad), jnp.float32),
        grid=grid,
        in_specs=[
            pl.BlockSpec((tb, k), lambda i: (i, 0)),            # x tile (pipelined)
            pl.BlockSpec((k, hidden), lambda i: (0, 0)),        # folded W1 (resident)
            pl.BlockSpec((1, hidden), lambda i: (0, 0)),
            pl.BlockSpec((hidden, hidden2), lambda i: (0, 0)),
            pl.BlockSpec((1, hidden2), lambda i: (0, 0)),
            pl.BlockSpec((hidden2, out_pad), lambda i: (0, 0)),
            pl.BlockSpec((1, out_pad), lambda i: (0, 0)),
        ],
        out_specs=pl.BlockSpec((tb, out_pad), lambda i: (i, 0)),
        compiler_params=pltpu.CompilerParams(
            dimension_semantics=("parallel",)),
        cost_estimate=pl.CostEstimate(flops=flops, transcendentals=0,
                                      bytes_accessed=bytes_accessed),
    )(x_flat, w1_eff, b1, w2, b2, w3, b3)

    return out_p[:bsz, :out_dim]


# --------------------------------- reference -------------------------------------
def exit_block_reference(x, params):
    """Pure-JAX reference reproducing PyTorch semantics exactly."""
    w1, b1, w2, b2, w3, b3 = params
    bsz, c, h, w = x.shape
    p = POOL_DIM
    pooled = x.reshape(bsz, c, p, h // p, p, w // p).mean(axis=(3, 5))  # [B,C,P,P]
    feat = pooled.reshape(bsz, -1)                                      # (c, pi, pj) order
    h1 = jnp.maximum(feat @ w1 + b1, 0.0)
    h2 = jnp.maximum(h1 @ w2 + b2, 0.0)
    return h2 @ w3 + b3


def init_params(key):
    """Deterministic synthetic parameters with the module's shapes.

    PyTorch nn.Linear stores weight as [out, in]; we store the transposed
    [in, out] form directly since y = x @ W.T + b.
    """
    D = IN_CHANNELS * POOL_DIM * POOL_DIM
    k1, k2, k3, k4, k5, k6 = jax.random.split(key, 6)
    w1 = jax.random.normal(k1, (D, HIDDEN), jnp.float32) * 0.1
    b1 = jax.random.normal(k2, (HIDDEN,), jnp.float32) * 0.1
    w2 = jax.random.normal(k3, (HIDDEN, HIDDEN2), jnp.float32) * 0.1
    b2 = jax.random.normal(k4, (HIDDEN2,), jnp.float32) * 0.1
    w3 = jax.random.normal(k5, (HIDDEN2, OUT_CHANNELS), jnp.float32) * 0.1
    b3 = jax.random.normal(k6, (OUT_CHANNELS,), jnp.float32) * 0.1
    return (w1, b1, w2, b2, w3, b3)


if __name__ == "__main__":
    key = jax.random.PRNGKey(0)
    kx, kp = jax.random.split(key)
    x = jax.random.normal(kx, (B, IN_CHANNELS, H, W), jnp.float32)
    params = init_params(kp)

    prepared = prepare_params(params)           # one-time fold (pool -> W1_eff, pad out dim)
    out = exit_block_forward(x, prepared)
    out = jax.block_until_ready(out)

    ref = exit_block_reference(x, params)
    np.testing.assert_allclose(np.asarray(out), np.asarray(ref), rtol=1e-5, atol=1e-5)

    print("KERNEL_OK")
</pallas_src>

<mosaic_0001>
module attributes {stable_mosaic.version = 11 : i64} {
  func.func @exit_mlp_kernel(%arg0: i32, %arg1: memref<8x1024xf32, #tpu.memory_space<vmem>>, %arg2: memref<1024x32xf32, #tpu.memory_space<vmem>>, %arg3: memref<1x32xf32, #tpu.memory_space<vmem>>, %arg4: memref<32x16xf32, #tpu.memory_space<vmem>>, %arg5: memref<1x16xf32, #tpu.memory_space<vmem>>, %arg6: memref<16x128xf32, #tpu.memory_space<vmem>>, %arg7: memref<1x128xf32, #tpu.memory_space<vmem>>, %arg8: memref<8x128xf32, #tpu.memory_space<vmem>>) attributes {dimension_semantics = [#tpu.dimension_semantics<parallel>], iteration_bounds = array<i64: 1>, scalar_prefetch = 0 : i64, scratch_operands = 0 : i64, tpu.core_type = #tpu.core_type<tc>, window_params = [{transform_indices = @transform_0, window_bounds = array<i64: 8, 1024>}, {pipeline_mode = #tpu.pipeline_mode<synchronous>, transform_indices = @transform_1, window_bounds = array<i64: 1024, 32>}, {pipeline_mode = #tpu.pipeline_mode<synchronous>, transform_indices = @transform_2, window_bounds = array<i64: 1, 32>}, {pipeline_mode = #tpu.pipeline_mode<synchronous>, transform_indices = @transform_3, window_bounds = array<i64: 32, 16>}, {pipeline_mode = #tpu.pipeline_mode<synchronous>, transform_indices = @transform_4, window_bounds = array<i64: 1, 16>}, {pipeline_mode = #tpu.pipeline_mode<synchronous>, transform_indices = @transform_5, window_bounds = array<i64: 16, 128>}, {pipeline_mode = #tpu.pipeline_mode<synchronous>, transform_indices = @transform_6, window_bounds = array<i64: 1, 128>}, {transform_indices = @transform_7, window_bounds = array<i64: 8, 128>}]} {
    %c0 = arith.constant 0 : index
    %c0_0 = arith.constant 0 : index
    %0 = vector.load %arg1[%c0, %c0_0] : memref<8x1024xf32, #tpu.memory_space<vmem>>, vector<8x1024xf32>
    %c0_1 = arith.constant 0 : index
    %c0_2 = arith.constant 0 : index
    %1 = vector.load %arg2[%c0_1, %c0_2] : memref<1024x32xf32, #tpu.memory_space<vmem>>, vector<1024x32xf32>
    %cst = arith.constant dense<0.000000e+00> : vector<8x32xf32>
    %2 = tpu.matmul %0, %1, %cst {dimension_numbers = #tpu.dot_dimension_numbers<[1], [0], [0], [1], [0, 0, 1, 1], [], []>} : vector<8x1024xf32>, vector<1024x32xf32>, vector<8x32xf32> -> vector<8x32xf32>
    %c0_3 = arith.constant 0 : index
    %c0_4 = arith.constant 0 : index
    %3 = vector.load %arg3[%c0_3, %c0_4] : memref<1x32xf32, #tpu.memory_space<vmem>>, vector<1x32xf32>
    %4 = vector.broadcast %3 : vector<1x32xf32> to vector<8x32xf32>
    %5 = arith.addf %2, %4 : vector<8x32xf32>
    %cst_5 = arith.constant 0.000000e+00 : f32
    %6 = vector.broadcast %cst_5 : f32 to vector<8x32xf32>
    %7 = arith.maximumf %5, %6 : vector<8x32xf32>
    %c0_6 = arith.constant 0 : index
    %c0_7 = arith.constant 0 : index
    %8 = vector.load %arg4[%c0_6, %c0_7] : memref<32x16xf32, #tpu.memory_space<vmem>>, vector<32x16xf32>
    %cst_8 = arith.constant dense<0.000000e+00> : vector<8x16xf32>
    %9 = tpu.matmul %7, %8, %cst_8 {dimension_numbers = #tpu.dot_dimension_numbers<[1], [0], [0], [1], [0, 0, 1, 1], [], []>} : vector<8x32xf32>, vector<32x16xf32>, vector<8x16xf32> -> vector<8x16xf32>
    %c0_9 = arith.constant 0 : index
    %c0_10 = arith.constant 0 : index
    %10 = vector.load %arg5[%c0_9, %c0_10] : memref<1x16xf32, #tpu.memory_space<vmem>>, vector<1x16xf32>
    %11 = vector.broadcast %10 : vector<1x16xf32> to vector<8x16xf32>
    %12 = arith.addf %9, %11 : vector<8x16xf32>
    %cst_11 = arith.constant 0.000000e+00 : f32
    %13 = vector.broadcast %cst_11 : f32 to vector<8x16xf32>
    %14 = arith.maximumf %12, %13 : vector<8x16xf32>
    %c0_12 = arith.constant 0 : index
    %c0_13 = arith.constant 0 : index
    %15 = vector.load %arg6[%c0_12, %c0_13] : memref<16x128xf32, #tpu.memory_space<vmem>>, vector<16x128xf32>
    %cst_14 = arith.constant dense<0.000000e+00> : vector<8x128xf32>
    %16 = tpu.matmul %14, %15, %cst_14 {dimension_numbers = #tpu.dot_dimension_numbers<[1], [0], [0], [1], [0, 0, 1, 1], [], []>} : vector<8x16xf32>, vector<16x128xf32>, vector<8x128xf32> -> vector<8x128xf32>
    %c0_15 = arith.constant 0 : index
    %c0_16 = arith.constant 0 : index
    %17 = vector.load %arg7[%c0_15, %c0_16] : memref<1x128xf32, #tpu.memory_space<vmem>>, vector<1x128xf32>
    %18 = vector.broadcast %17 : vector<1x128xf32> to vector<8x128xf32>
    %19 = arith.addf %16, %18 : vector<8x128xf32>
    %c0_17 = arith.constant 0 : index
    %c0_18 = arith.constant 0 : index
    %20 = vector.load %arg8[%c0_17, %c0_18] : memref<8x128xf32, #tpu.memory_space<vmem>>, vector<8x128xf32>
    tpu.vector_store %arg8[%c0_17, %c0_18], %19 {strides = array<i32>} : memref<8x128xf32, #tpu.memory_space<vmem>>, vector<8x128xf32>,
    return
  }
  func.func @transform_0(%arg0: i32) -> (i32, i32) {
    %c0_i32 = arith.constant 0 : i32
    %c0_i32_0 = arith.constant 0 : i32
    return %arg0, %c0_i32 : i32, i32
  }
  func.func @transform_1(%arg0: i32) -> (i32, i32) {
    %c0_i32 = arith.constant 0 : i32
    %c0_i32_0 = arith.constant 0 : i32
    %c0_i32_1 = arith.constant 0 : i32
    return %c0_i32, %c0_i32_0 : i32, i32
  }
  func.func @transform_2(%arg0: i32) -> (i32, i32) {
    %c0_i32 = arith.constant 0 : i32
    %c0_i32_0 = arith.constant 0 : i32
    %c0_i32_1 = arith.constant 0 : i32
    return %c0_i32, %c0_i32_0 : i32, i32
  }
  func.func @transform_3(%arg0: i32) -> (i32, i32) {
    %c0_i32 = arith.constant 0 : i32
    %c0_i32_0 = arith.constant 0 : i32
    %c0_i32_1 = arith.constant 0 : i32
    return %c0_i32, %c0_i32_0 : i32, i32
  }
  func.func @transform_4(%arg0: i32) -> (i32, i32) {
    %c0_i32 = arith.constant 0 : i32
    %c0_i32_0 = arith.constant 0 : i32
    %c0_i32_1 = arith.constant 0 : i32
    return %c0_i32, %c0_i32_0 : i32, i32
  }
  func.func @transform_5(%arg0: i32) -> (i32, i32) {
    %c0_i32 = arith.constant 0 : i32
    %c0_i32_0 = arith.constant 0 : i32
    %c0_i32_1 = arith.constant 0 : i32
    return %c0_i32, %c0_i32_0 : i32, i32
  }
  func.func @transform_6(%arg0: i32) -> (i32, i32) {
    %c0_i32 = arith.constant 0 : i32
    %c0_i32_0 = arith.constant 0 : i32
    %c0_i32_1 = arith.constant 0 : i32
    return %c0_i32, %c0_i32_0 : i32, i32
  }
  func.func @transform_7(%arg0: i32) -> (i32, i32) {
    %c0_i32 = arith.constant 0 : i32
    %c0_i32_0 = arith.constant 0 : i32
    return %arg0, %c0_i32 : i32, i32
  }
}

</mosaic_0001>

<bundles_post_ra>
// kernel: tpu_custom_call.1
= control target key start
LH: loop header
LB: loop body
LE: loop exit
PB: predicated region body
PF: predicated region fallthrough
CT: control target
= control target key end

     0   :  { %s1462_s0 = inlined_call_operand.vmem [shape: f32[8,1024], index: 0, kind: input, shape index: {}]   ;;  %s1463_s1 = inlined_call_operand.vmem [shape: f32[1024,32], index: 1, kind: input, shape index: {}]   ;;  %s1464_s2 = inlined_call_operand.vmem [shape: f32[1,32], index: 2, kind: input, shape index: {}]   ;;  %s1465_s3 = inlined_call_operand.vmem [shape: f32[32,16], index: 3, kind: input, shape index: {}]   ;;  %s1466_s4 = inlined_call_operand.vmem [shape: f32[1,16], index: 4, kind: input, shape index: {}]   ;;  %s1467_s5 = inlined_call_operand.vmem [shape: f32[16,128], index: 5, kind: input, shape index: {}]   ;;  %s1468_s6 = inlined_call_operand.vmem [shape: f32[1,128], index: 6, kind: input, shape index: {}]   ;;  %s1469_s7 = inlined_call_operand.hbm [shape: f32[8,128], index: 7, kind: output, shape index: {}]  }
   0x1   :  { %v51_v0 = vld [vmem:[%s1463_s1 + $0x80] sm:$0xff]  ;;  %v52_v1 = vld [vmem:[%s1463_s1 + $0x88] sm:$0xff]  ;;  %v53_v11 = vld [vmem:[%s1463_s1 + $0x90] sm:$0xff] }
   0x2   :  { %v35_v2 = vld [vmem:[%s1463_s1] sm:$0xff]  ;;  %v806_v3 = vpack.c.bf16 %v52_v1, %v51_v0  ;;  %v36_v4 = vld [vmem:[%s1463_s1 + $0x8] sm:$0xff]  ;;  %v54_v13 = vld [vmem:[%s1463_s1 + $0x98] sm:$0xff] }
   0x3   :  { %v83_v5 = vld [vmem:[%s1463_s1 + $0x180] sm:$0xff]  ;;  %v84_v6 = vld [vmem:[%s1463_s1 + $0x188] sm:$0xff]  ;;  %v808_v7 = vpack.c.bf16 %v36_v4, %v35_v2  ;;  %v37_v14 = vld [vmem:[%s1463_s1 + $0x10] sm:$0xff]  ;;  %v810_v16 = vpack.c.bf16 %v54_v13, %v53_v11 }
   0x4   :  { %v838_v8 = vpack.c.bf16 %v84_v6, %v83_v5  ;;  %v67_v9 = vld [vmem:[%s1463_s1 + $0x100] sm:$0xff]  ;;  %v68_v10 = vld [vmem:[%s1463_s1 + $0x108] sm:$0xff]  ;;  %807 = vmatprep.subr.bf16.mxu0 %v806_v3  ;;  %v38_v15 = vld [vmem:[%s1463_s1 + $0x18] sm:$0xff] }
   0x5   :  { %v840_v12 = vpack.c.bf16 %v68_v10, %v67_v9  ;;  %809 = vmatpush3.bf16.msra.mxu0 %v808_v7  ;;  %v812_v17 = vpack.c.bf16 %v38_v15, %v37_v14  ;;  %v85_v18 = vld [vmem:[%s1463_s1 + $0x190] sm:$0xff]  ;;  %v86_v19 = vld [vmem:[%s1463_s1 + $0x198] sm:$0xff]  ;;  %v55_v23 = vld [vmem:[%s1463_s1 + $0xa0] sm:$0xff] }
   0x6   :  { %839 = vmatprep.subr.bf16.mxu1 %v838_v8  ;;  %v69_v20 = vld [vmem:[%s1463_s1 + $0x110] sm:$0xff]  ;;  %v842_v21 = vpack.c.bf16 %v86_v19, %v85_v18  ;;  %v70_v22 = vld [vmem:[%s1463_s1 + $0x118] sm:$0xff]  ;;  %v56_v24 = vld [vmem:[%s1463_s1 + $0xa8] sm:$0xff]  ;;  %811 = vmatprep.subr.bf16.mxu0 %v810_v16 }
   0x7   :  { %841 = vmatpush3.bf16.msra.mxu1 %v840_v12  ;;  %v844_v25 = vpack.c.bf16 %v70_v22, %v69_v20  ;;  %v814_v26 = vpack.c.bf16 %v56_v24, %v55_v23  ;;  %v39_v27 = vld [vmem:[%s1463_s1 + $0x20] sm:$0xff]  ;;  %v40_v28 = vld [vmem:[%s1463_s1 + $0x28] sm:$0xff]  ;;  %v57_v35 = vld [vmem:[%s1463_s1 + $0xb0] sm:$0xff] }
   0x8   :  { %v87_v29 = vld [vmem:[%s1463_s1 + $0x1a0] sm:$0xff]  ;;  %843 = vmatprep.subr.bf16.mxu1 %v842_v21  ;;  %v88_v30 = vld [vmem:[%s1463_s1 + $0x1a8] sm:$0xff]  ;;  %v816_v33 = vpack.c.bf16 %v40_v28, %v39_v27  ;;  %v58_v36 = vld [vmem:[%s1463_s1 + $0xb8] sm:$0xff] }
   0x9   :  { %v71_v31 = vld [vmem:[%s1463_s1 + $0x120] sm:$0xff]  ;;  %v72_v32 = vld [vmem:[%s1463_s1 + $0x128] sm:$0xff]  ;;  %813 = vmatpush3.bf16.msra.mxu0 %v812_v17  ;;  %v846_v34 = vpack.c.bf16 %v88_v30, %v87_v29  ;;  %v41_v37 = vld [vmem:[%s1463_s1 + $0x30] sm:$0xff]  ;;  %v818_v39 = vpack.c.bf16 %v58_v36, %v57_v35 }
   0xa   :  { %815 = vmatprep.subr.bf16.mxu0 %v814_v26  ;;  %v848_v38 = vpack.c.bf16 %v72_v32, %v71_v31  ;;  %v42_v40 = vld [vmem:[%s1463_s1 + $0x38] sm:$0xff]  ;;  %v89_v41 = vld [vmem:[%s1463_s1 + $0x1b0] sm:$0xff]  ;;  %v59_v46 = vld [vmem:[%s1463_s1 + $0xc0] sm:$0xff] }
   0xb   :  { %845 = vmatpush3.bf16.msra.mxu1 %v844_v25  ;;  %v90_v42 = vld [vmem:[%s1463_s1 + $0x1b8] sm:$0xff]  ;;  %v73_v44 = vld [vmem:[%s1463_s1 + $0x130] sm:$0xff]  ;;  %v60_v47 = vld [vmem:[%s1463_s1 + $0xc8] sm:$0xff]  ;;  %v820_v48 = vpack.c.bf16 %v42_v40, %v41_v37 }
   0xc   :  { %847 = vmatprep.subr.bf16.mxu1 %v846_v34  ;;  %v850_v43 = vpack.c.bf16 %v90_v42, %v89_v41  ;;  %v74_v45 = vld [vmem:[%s1463_s1 + $0x138] sm:$0xff]  ;;  %v91_v49 = vld [vmem:[%s1463_s1 + $0x1c0] sm:$0xff]  ;;  %v92_v50 = vld [vmem:[%s1463_s1 + $0x1c8] sm:$0xff]  ;;  %v822_v52 = vpack.c.bf16 %v60_v47, %v59_v46 }
   0xd   :  { %817 = vmatpush3.bf16.msra.mxu0 %v816_v33  ;;  %v852_v51 = vpack.c.bf16 %v74_v45, %v73_v44  ;;  %v43_v53 = vld [vmem:[%s1463_s1 + $0x40] sm:$0xff]  ;;  %v44_v54 = vld [vmem:[%s1463_s1 + $0x48] sm:$0xff]  ;;  %v854_v56 = vpack.c.bf16 %v92_v50, %v91_v49  ;;  %v61_v58 = vld [vmem:[%s1463_s1 + $0xd0] sm:$0xff] }
   0xe   :  { %819 = vmatprep.subr.bf16.mxu0 %v818_v39  ;;  %v75_v55 = vld [vmem:[%s1463_s1 + $0x140] sm:$0xff]  ;;  %v76_v57 = vld [vmem:[%s1463_s1 + $0x148] sm:$0xff]  ;;  %v62_v59 = vld [vmem:[%s1463_s1 + $0xd8] sm:$0xff]  ;;  %v824_v62 = vpack.c.bf16 %v44_v54, %v43_v53 }
   0xf   :  { %849 = vmatpush3.bf16.msra.mxu1 %v848_v38  ;;  %v93_v60 = vld [vmem:[%s1463_s1 + $0x1d0] sm:$0xff]  ;;  %v94_v61 = vld [vmem:[%s1463_s1 + $0x1d8] sm:$0xff]  ;;  %v856_v63 = vpack.c.bf16 %v76_v57, %v75_v55  ;;  %v826_v0 = vpack.c.bf16 %v62_v59, %v61_v58  ;;  %v63_v6 = vld [vmem:[%s1463_s1 + $0xe0] sm:$0xff] }
  0x10   :  { %851 = vmatprep.subr.bf16.mxu1 %v850_v43  ;;  %v45_v1 = vld [vmem:[%s1463_s1 + $0x50] sm:$0xff]  ;;  %v46_v2 = vld [vmem:[%s1463_s1 + $0x58] sm:$0xff]  ;;  %v858_v4 = vpack.c.bf16 %v94_v61, %v93_v60  ;;  %v64_v7 = vld [vmem:[%s1463_s1 + $0xe8] sm:$0xff] }
  0x11   :  { %821 = vmatpush3.bf16.msra.mxu0 %v820_v48  ;;  %v77_v3 = vld [vmem:[%s1463_s1 + $0x150] sm:$0xff]  ;;  %v78_v5 = vld [vmem:[%s1463_s1 + $0x158] sm:$0xff]  ;;  %v95_v8 = vld [vmem:[%s1463_s1 + $0x1e0] sm:$0xff]  ;;  %v828_v10 = vpack.c.bf16 %v46_v2, %v45_v1  ;;  %v830_v14 = vpack.c.bf16 %v64_v7, %v63_v6 }
  0x12   :  { %823 = vmatprep.subr.bf16.mxu0 %v822_v52  ;;  %v96_v9 = vld [vmem:[%s1463_s1 + $0x1e8] sm:$0xff]  ;;  %v47_v11 = vld [vmem:[%s1463_s1 + $0x60] sm:$0xff]  ;;  %v860_v13 = vpack.c.bf16 %v78_v5, %v77_v3  ;;  %v65_v19 = vld [vmem:[%s1463_s1 + $0xf0] sm:$0xff] }
  0x13   :  { %853 = vmatpush3.bf16.msra.mxu1 %v852_v51  ;;  %v48_v12 = vld [vmem:[%s1463_s1 + $0x68] sm:$0xff]  ;;  %v79_v15 = vld [vmem:[%s1463_s1 + $0x160] sm:$0xff]  ;;  %v862_v18 = vpack.c.bf16 %v96_v9, %v95_v8  ;;  %v66_v20 = vld [vmem:[%s1463_s1 + $0xf8] sm:$0xff] }
  0x14   :  { %855 = vmatprep.subr.bf16.mxu1 %v854_v56  ;;  %v80_v16 = vld [vmem:[%s1463_s1 + $0x168] sm:$0xff]  ;;  %v30_v21 = vld [vmem:[%s1462_s0 + $0x18] sm:$0xff]  ;;  %v97_v22 = vld [vmem:[%s1463_s1 + $0x1f0] sm:$0xff]  ;;  %v832_v24 = vpack.c.bf16 %v48_v12, %v47_v11  ;;  %v834_v26 = vpack.c.bf16 %v66_v20, %v65_v19 }
  0x15   :  { %825 = vmatpush3.bf16.msra.mxu0 %v824_v62  ;;  %v28_v17 = vld [vmem:[%s1462_s0 + $0x8] sm:$0xff]  ;;  %v98_v23 = vld [vmem:[%s1463_s1 + $0x1f8] sm:$0xff]  ;;  %304 = vmatprep.mubr.f32.mxu1 %v30_v21  ;;  %v864_v25 = vpack.c.bf16 %v80_v16, %v79_v15  ;;  %v49_v27 = vld [vmem:[%s1463_s1 + $0x70] sm:$0xff] }
  0x16   :  { %827 = vmatprep.subr.bf16.mxu0 %v826_v0  ;;  %234 = vmatprep.mubr.f32.mxu0 %v28_v17  ;;  %v50_v28 = vld [vmem:[%s1463_s1 + $0x78] sm:$0xff]  ;;  %v81_v29 = vld [vmem:[%s1463_s1 + $0x170] sm:$0xff]  ;;  %v866_v30 = vpack.c.bf16 %v98_v23, %v97_v22  ;;  %v115_v32 = vld [vmem:[%s1463_s1 + $0x280] sm:$0xff] }
  0x17   :  { %857 = vmatpush3.bf16.msra.mxu1 %v856_v63  ;;  %v82_v31 = vld [vmem:[%s1463_s1 + $0x178] sm:$0xff]  ;;  %v116_v33 = vld [vmem:[%s1463_s1 + $0x288] sm:$0xff]  ;;  %v147_v34 = vld [vmem:[%s1463_s1 + $0x380] sm:$0xff]  ;;  %v836_v36 = vpack.c.bf16 %v50_v28, %v49_v27 }
  0x18   :  { %859 = vmatprep.subr.bf16.mxu1 %v858_v4  ;;  %v148_v35 = vld [vmem:[%s1463_s1 + $0x388] sm:$0xff]  ;;  %v868_v37 = vpack.c.bf16 %v82_v31, %v81_v29  ;;  %v870_v38 = vpack.c.bf16 %v116_v33, %v115_v32  ;;  %v99_v39 = vld [vmem:[%s1463_s1 + $0x200] sm:$0xff]  ;;  %v117_v44 = vld [vmem:[%s1463_s1 + $0x290] sm:$0xff] }
  0x19   :  { %829 = vmatpush3.bf16.msra.mxu0 %v828_v10  ;;  %v100_v40 = vld [vmem:[%s1463_s1 + $0x208] sm:$0xff]  ;;  %v131_v41 = vld [vmem:[%s1463_s1 + $0x300] sm:$0xff]  ;;  %v902_v42 = vpack.c.bf16 %v148_v35, %v147_v34  ;;  %v118_v45 = vld [vmem:[%s1463_s1 + $0x298] sm:$0xff] }
  0x1a   :  { %831 = vmatprep.subr.bf16.mxu0 %v830_v14  ;;  %v132_v43 = vld [vmem:[%s1463_s1 + $0x308] sm:$0xff]  ;;  %v149_v46 = vld [vmem:[%s1463_s1 + $0x390] sm:$0xff]  ;;  %v150_v47 = vld [vmem:[%s1463_s1 + $0x398] sm:$0xff]  ;;  %v872_v49 = vpack.c.bf16 %v100_v40, %v99_v39  ;;  %v874_v52 = vpack.c.bf16 %v118_v45, %v117_v44 }
  0x1b   :  { %861 = vmatpush3.bf16.msra.mxu1 %v860_v13  ;;  %v27_v48 = vld [vmem:[%s1462_s0] sm:$0xff]  ;;  %v29_v50 = vld [vmem:[%s1462_s0 + $0x10] sm:$0xff]  ;;  %v904_v51 = vpack.c.bf16 %v132_v43, %v131_v41  ;;  %v102_v54 = vld [vmem:[%s1463_s1 + $0x218] sm:$0xff]  ;;  %v906_v56 = vpack.c.bf16 %v150_v47, %v149_v46 }
  0x1c   :  { %863 = vmatprep.subr.bf16.mxu1 %v862_v18  ;;  %v101_v53 = vld [vmem:[%s1463_s1 + $0x210] sm:$0xff]  ;;  %v134_v57 = vld [vmem:[%s1463_s1 + $0x318] sm:$0xff]  ;;  %v119_v58 = vld [vmem:[%s1463_s1 + $0x2a0] sm:$0xff] }
  0x1d   :  { %833 = vmatpush3.bf16.msra.mxu0 %v832_v24  ;;  %v133_v55 = vld [vmem:[%s1463_s1 + $0x310] sm:$0xff]  ;;  %v120_v59 = vld [vmem:[%s1463_s1 + $0x2a8] sm:$0xff]  ;;  %v151_v60 = vld [vmem:[%s1463_s1 + $0x3a0] sm:$0xff]  ;;  %v876_v62 = vpack.c.bf16 %v102_v54, %v101_v53 }
  0x1e   :  { %835 = vmatprep.subr.bf16.mxu0 %v834_v26  ;;  %v152_v61 = vld [vmem:[%s1463_s1 + $0x3a8] sm:$0xff]  ;;  %v908_v63 = vpack.c.bf16 %v134_v57, %v133_v55  ;;  %v878_v0 = vpack.c.bf16 %v120_v59, %v119_v58  ;;  %v103_v1 = vld [vmem:[%s1463_s1 + $0x220] sm:$0xff]  ;;  %v121_v6 = vld [vmem:[%s1463_s1 + $0x2b0] sm:$0xff] }
  0x1f   :  { %865 = vmatpush3.bf16.msra.mxu1 %v864_v25  ;;  %v104_v2 = vld [vmem:[%s1463_s1 + $0x228] sm:$0xff]  ;;  %v135_v3 = vld [vmem:[%s1463_s1 + $0x320] sm:$0xff]  ;;  %v910_v4 = vpack.c.bf16 %v152_v61, %v151_v60  ;;  %v122_v7 = vld [vmem:[%s1463_s1 + $0x2b8] sm:$0xff] }
  0x20   :  { %867 = vmatprep.subr.bf16.mxu1 %v866_v30  ;;  %v136_v5 = vld [vmem:[%s1463_s1 + $0x328] sm:$0xff]  ;;  %v153_v8 = vld [vmem:[%s1463_s1 + $0x3b0] sm:$0xff]  ;;  %v154_v9 = vld [vmem:[%s1463_s1 + $0x3b8] sm:$0xff]  ;;  %v880_v10 = vpack.c.bf16 %v104_v2, %v103_v1  ;;  %v882_v12 = vpack.c.bf16 %v122_v7, %v121_v6 }
  0x21   :  { %837 = vmatpush3.bf16.msra.mxu0 %v836_v36  ;;  %v912_v11 = vpack.c.bf16 %v136_v5, %v135_v3  ;;  %v105_v13 = vld [vmem:[%s1463_s1 + $0x230] sm:$0xff]  ;;  %v106_v14 = vld [vmem:[%s1463_s1 + $0x238] sm:$0xff]  ;;  %v914_v16 = vpack.c.bf16 %v154_v9, %v153_v8  ;;  %v123_v18 = vld [vmem:[%s1463_s1 + $0x2c0] sm:$0xff] }
  0x22   :  { %871 = vmatprep.subr.bf16.mxu0 %v870_v38  ;;  %v137_v15 = vld [vmem:[%s1463_s1 + $0x330] sm:$0xff]  ;;  %v138_v17 = vld [vmem:[%s1463_s1 + $0x338] sm:$0xff]  ;;  %v124_v19 = vld [vmem:[%s1463_s1 + $0x2c8] sm:$0xff]  ;;  %v884_v22 = vpack.c.bf16 %v106_v14, %v105_v13 }
  0x23   :  { %869 = vmatpush3.bf16.msra.mxu1 %v868_v37  ;;  %v155_v20 = vld [vmem:[%s1463_s1 + $0x3c0] sm:$0xff]  ;;  %v156_v21 = vld [vmem:[%s1463_s1 + $0x3c8] sm:$0xff]  ;;  %v34_v25 = vld [vmem:[%s1462_s0 + $0x38] sm:$0xff]  ;;  %v916_v26 = vpack.c.bf16 %v138_v17, %v137_v15  ;;  %v886_v27 = vpack.c.bf16 %v124_v19, %v123_v18 }
  0x24   :  { %903 = vmatprep.subr.bf16.mxu1 %v902_v42  ;;  %235 = vmatmul.mubr.f32.vlgmr.msra.gmra.mrb[0].mxu0 %v27_v48  ;;  %v107_v23 = vld [vmem:[%s1463_s1 + $0x240] sm:$0xff]  ;;  %v32_v24 = vld [vmem:[%s1462_s0 + $0x28] sm:$0xff] }
  0x25   :  { %873 = vmatpush3.bf16.msra.mxu0 %v872_v49  ;;  %v108_v28 = vld [vmem:[%s1463_s1 + $0x248] sm:$0xff]  ;;  %v139_v29 = vld [vmem:[%s1463_s1 + $0x340] sm:$0xff] }
  0x26   :  { %305 = vmatmul.mubr.f32.vlgmr.msra.gmra.mrb[0].mxu1 %v29_v50  ;;  %875 = vmatprep.subr.bf16.mxu0 %v874_v52 }
  0x27   :  { %905 = vmatpush3.bf16.msra.mxu1 %v904_v51 }
  0x28   :  { %907 = vmatprep.subr.bf16.mxu1 %v906_v56 }
  0x29   :  { %877 = vmatpush3.bf16.msra.mxu0 %v876_v62 }
  0x2a   :  { %879 = vmatprep.subr.bf16.mxu0 %v878_v0 }
  0x2b   :  { %909 = vmatpush3.bf16.msra.mxu1 %v908_v63 }
  0x2c   :  { %911 = vmatprep.subr.bf16.mxu1 %v910_v4 }
  0x2d   :  { %881 = vmatpush3.bf16.msra.mxu0 %v880_v10 }
  0x2e   :  { %883 = vmatprep.subr.bf16.mxu0 %v882_v12 }
  0x2f   :  { %913 = vmatpush3.bf16.msra.mxu1 %v912_v11 }
  0x30   :  { %12 = vsyncpa [#allocation3], 0  ;;  %915 = vmatprep.subr.bf16.mxu1 %v914_v16  ;;  %v918_v30 = vpack.c.bf16 %v156_v21, %v155_v20  ;;  %v140_v31 = vld [vmem:[%s1463_s1 + $0x348] sm:$0xff]  ;;  %v125_v32 = vld [vmem:[%s1463_s1 + $0x2d0] sm:$0xff]  ;;  %374 = vmatprep.mubr.f32.mxu0 %v32_v24  ;;  %v888_v36 = vpack.c.bf16 %v108_v28, %v107_v23  ;;  %v971_v11 = vmov 0.0|0.0   ;;  %vm972_vm0 = vmmov 0  }
  0x31   :  { %v126_v33 = vld [vmem:[%s1463_s1 + $0x2d8] sm:$0xff]  ;;  %v157_v34 = vld [vmem:[%s1463_s1 + $0x3d0] sm:$0xff]  ;;  %444 = vmatprep.mubr.f32.mxu1 %v34_v25  ;;  %885 = vmatpush3.bf16.msra.mxu0 %v884_v22  ;;  %v920_v37 = vpack.c.bf16 %v140_v31, %v139_v29  ;;  %v127_v44 = vld [vmem:[%s1463_s1 + $0x2e0] sm:$0xff]  ;;  %v973_v15 = vmov 0.0   ;;  %vm462_vm1 = vcmask 261120   ;;  %vm546_vm2 = vcmask 130048  }
  0x32   :  { %v158_v35 = vld [vmem:[%s1463_s1 + $0x3d8] sm:$0xff]  ;;  %887 = vmatprep.subr.bf16.mxu0 %v886_v27  ;;  %v890_v38 = vpack.c.bf16 %v126_v33, %v125_v32  ;;  %v109_v39 = vld [vmem:[%s1463_s1 + $0x250] sm:$0xff]  ;;  %v128_v45 = vld [vmem:[%s1463_s1 + $0x2e8] sm:$0xff]  ;;  %s974_s11 = smov [#allocation2]  }
  0x33   :  { %917 = vmatpush3.bf16.msra.mxu1 %v916_v26  ;;  %v110_v40 = vld [vmem:[%s1463_s1 + $0x258] sm:$0xff]  ;;  %v141_v41 = vld [vmem:[%s1463_s1 + $0x350] sm:$0xff]  ;;  %v922_v42 = vpack.c.bf16 %v158_v35, %v157_v34  ;;  %v159_v46 = vld [vmem:[%s1463_s1 + $0x3e0] sm:$0xff]  ;;  %v894_v50 = vpack.c.bf16 %v128_v45, %v127_v44  ;;  %s627_s12 = sshll.u32 %s974_s11, 4  ;;  %s628_s12 = int_to_ptr.vmem [resolvable:$true] %s627_s12 }
  0x34   :  { %919 = vmatprep.subr.bf16.mxu1 %v918_v30  ;;  %v142_v43 = vld [vmem:[%s1463_s1 + $0x358] sm:$0xff]  ;;  %v160_v47 = vld [vmem:[%s1463_s1 + $0x3e8] sm:$0xff]  ;;  %v892_v48 = vpack.c.bf16 %v110_v40, %v109_v39  ;;  %v111_v51 = vld [vmem:[%s1463_s1 + $0x260] sm:$0xff]  ;;  %p952_p1 = scmp.lt.s32.totalorder %s628_s12, %s628_s12 }
  0x35   :  { %889 = vmatpush3.bf16.msra.mxu0 %v888_v36  ;;  %v924_v49 = vpack.c.bf16 %v142_v43, %v141_v41  ;;  %v112_v52 = vld [vmem:[%s1463_s1 + $0x268] sm:$0xff]  ;;  %v143_v53 = vld [vmem:[%s1463_s1 + $0x360] sm:$0xff]  ;;  %v926_v54 = vpack.c.bf16 %v160_v47, %v159_v46  ;;  %v129_v56 = vld [vmem:[%s1463_s1 + $0x2f0] sm:$0xff] }
  0x36   :  { %891 = vmatprep.subr.bf16.mxu0 %v890_v38  ;;  %v144_v55 = vld [vmem:[%s1463_s1 + $0x368] sm:$0xff]  ;;  %v130_v57 = vld [vmem:[%s1463_s1 + $0x2f8] sm:$0xff]  ;;  %v161_v58 = vld [vmem:[%s1463_s1 + $0x3f0] sm:$0xff]  ;;  %v896_v60 = vpack.c.bf16 %v112_v52, %v111_v51 }
  0x37   :  { %921 = vmatpush3.bf16.msra.mxu1 %v920_v37  ;;  %v162_v59 = vld [vmem:[%s1463_s1 + $0x3f8] sm:$0xff]  ;;  %v928_v61 = vpack.c.bf16 %v144_v55, %v143_v53  ;;  %v898_v62 = vpack.c.bf16 %v130_v57, %v129_v56  ;;  %v113_v63 = vld [vmem:[%s1463_s1 + $0x270] sm:$0xff]  ;;  %v31_v6 = vld [vmem:[%s1462_s0 + $0x20] sm:$0xff] }
  0x38   :  { %923 = vmatprep.subr.bf16.mxu1 %v922_v42  ;;  %v114_v0 = vld [vmem:[%s1463_s1 + $0x278] sm:$0xff]  ;;  %v930_v1 = vpack.c.bf16 %v162_v59, %v161_v58  ;;  %v145_v2 = vld [vmem:[%s1463_s1 + $0x370] sm:$0xff]  ;;  %v451_v8 = vld [vmem:[%s1465_s3] sm:$0xff] }
  0x39   :  { %893 = vmatpush3.bf16.msra.mxu0 %v892_v48  ;;  %v146_v3 = vld [vmem:[%s1463_s1 + $0x378] sm:$0xff]  ;;  %v900_v4 = vpack.c.bf16 %v114_v0, %v113_v63  ;;  %v33_v7 = vld [vmem:[%s1462_s0 + $0x30] sm:$0xff]  ;;  %v452_v9 = vld [vmem:[%s1465_s3 + $0x8] sm:$0xff] }
  0x3a   :  { %895 = vmatprep.subr.bf16.mxu0 %v894_v50  ;;  %v932_v5 = vpack.c.bf16 %v146_v3, %v145_v2  ;;  %v935_v10 = vpack.c.bf16 %v452_v9, %v451_v8  ;;  %v453_v12 = vld [vmem:[%s1465_s3 + $0x10] sm:$0xff]  ;;  %v454_v13 = vld [vmem:[%s1465_s3 + $0x18] sm:$0xff]  ;;  %v635_v17 = vld [vmem:[%s1464_s2] ss:$0 sm:$0xff] }
  0x3b   :  { %925 = vmatpush3.bf16.msra.mxu1 %v924_v49  ;;  %v938_v14 = vpack.c.bf16 %v454_v13, %v453_v12  ;;  %v537_v34 = vld [vmem:[%s1467_s5] sm:$0xff]  ;;  %v538_v35 = vld [vmem:[%s1467_s5 + $0x8] sm:$0xff]  ;;  %s947_s5 = scalar_lea.vmem %s628_s12, 128 }
  0x3c   :  { %927 = vmatprep.subr.bf16.mxu1 %v926_v54  ;;  %v941_v36 = vpack.c.bf16 %v538_v35, %v537_v34  ;;  %v636_v37 = vld [vmem:[%s1466_s4] ss:$0 sm:$0xff]  ;;  %p948_p0 = scmp.ne.s32.totalorder %s628_s12, %s947_s5  ;;  %p953_p2 = scmp.lt.s32.totalorder %s947_s5, %s947_s5 }
  0x3d   :  { %897 = vmatpush3.bf16.msra.mxu0 %v896_v60  ;;  %v638_v42 = vld [vmem:[%s1468_s6] ss:$0 sm:$0xff] }
  0x3e   :  { %899 = vmatprep.subr.bf16.mxu0 %v898_v62  ;;  %p954_p3 = por %p953_p2, %p952_p1 }
  0x3f   :  { %929 = vmatpush3.bf16.msra.mxu1 %v928_v61 }
  0x40   :  { %931 = vmatprep.subr.bf16.mxu1 %v930_v1  ;;  %p955_p4 = pnand %p954_p3, %p948_p0 }
  0x41   :  { %901 = vmatpush3.bf16.msra.mxu0 %v900_v4 }
  0x42   :  { %934 = vmatprep.subr.bf16.mxu0 %v971_v11 }
  0x43   :  { %933 = vmatpush3.bf16.msra.mxu1 %v932_v5 }
  0x44   :  { %375 = vmatmul.mubr.f32.vlgmr.msra.gmra.mrb[2].mxu0 %v31_v6  ;;  %940 = vmatprep.subr.bf16.mxu1 %v971_v11 }
  0x45   :  { %936 = vmatpush3.bf16.msra.mxu0 %v935_v10  ;;  %796 = vmatprep.mubr.msk.f32.mxu0 %vm972_vm0, %v973_v15 }
  0x46   :  { %445 = vmatmul.mubr.f32.vlgmr.msra.gmra.mrb[2].mxu1 %v33_v7  ;;  %937 = vmatprep.subr.bf16.mxu0 %v971_v11 }
  0x47   :  { %803 = vmatprep.mubr.msk.f32.mxu1 %vm972_vm0, %v973_v15  ;;  %942 = vmatpush3.bf16.msra.mxu1 %v941_v36 }
  0x49   :  { %939 = vmatpush3.bf16.msra.mxu0 %v938_v14 }
  0xf7   :  { %v672_v16 = vpop.f32.mrb[0].mxu0 }
  0xf8   :  { %v673_v18 = vpop.f32.mrb[1].mxu0 }
  0xf9   :  { %v707_v19 = vpop.f32.mrb[0].mxu1  ;;  %v674_v20 = vadd.f32 %v673_v18, %v672_v16 }
  0xfa   :  { %v708_v21 = vpop.f32.mrb[1].mxu1 }
  0xfb   :  { %v709_v22 = vadd.f32 %v708_v21, %v707_v19  ;;  %v237_v23 = vadd.f32 %v674_v20, %v635_v17 }
  0xfd   :  { %v307_v24 = vadd.f32 %v709_v22, %v237_v23 }
 0x117   :  { %v742_v25 = vpop.f32.mrb[2].mxu0 }
 0x118   :  { %v743_v26 = vpop.f32.mrb[3].mxu0 }
 0x119   :  { %v777_v27 = vpop.f32.mrb[2].mxu1  ;;  %v744_v28 = vadd.f32 %v743_v26, %v742_v25 }
 0x11a   :  { %v778_v29 = vpop.f32.mrb[3].mxu1 }
 0x11b   :  { %v779_v30 = vadd.f32 %v778_v29, %v777_v27  ;;  %v377_v31 = vadd.f32 %v744_v28, %v307_v24 }
 0x11d   :  { %v447_v32 = vadd.f32 %v779_v30, %v377_v31 }
 0x11f   :  { %v450_v33 = vmax.f32 %v447_v32, 0.0 }
 0x121   :  { %797 = vmatmul.mubr.msk.f32.vlgmr.msra.gmra.mrb[4].mxu0 %vm462_vm1, %v450_v33 }
 0x1f4   :  { %v532_v38 = vpop.f32.mrb[4].mxu0 }
 0x1f5   :  { %v533_v39 = vadd.f32 %v636_v37, %v532_v38  ;;  %v798_v40 = vpop.f32.mrb[5].mxu0 }
 0x1f7   :  { %v536_v41 = vmax.f32 %v533_v39, 0.0 }
 0x1f9   :  { %804 = vmatmul.mubr.msk.f32.vlgmr.msra.gmra.mrb[4].mxu1 %vm546_vm2, %v536_v41 }
 0x2cc   :  { %v616_v43 = vpop.f32.mrb[4].mxu1 }
 0x2cd   :  { %v617_v44 = vadd.f32 %v638_v42, %v616_v43  ;;  %v805_v45 = vpop.f32.mrb[5].mxu1 }
 0x2cf   :  { %620 = vst [vmem:[#allocation2] sm:$0xff] %v617_v44 }
 0x2d0   :  { %958 = shalt.err (!%p955_p4)
}
 0x2d1   :  { %s959_s14 = scalar_lea.hbm %s1469_s7, 128 }
 0x2d2   :  { %p960_p5 = scmp.ne.s32.totalorder %s1469_s7, %s959_s14  ;;  %p963_p6 = scmp.lt.u32.totalorder %s959_s14, %s1469_s7 }
 0x2d4   :  { %p965_p7 = pnand %p963_p6, %p960_p5 }
 0x2d6   :  { %968 = shalt.err (!%p965_p7)
}
 0x2d7   :  { %630 = dma.vmem_to_hbm [thread:$0]  %s628_s12, 128, %s1469_s7, [#allocation3]  }
 0x2d8   :  { %969 = dma.done.wait [#allocation3], 128  }
 0x2d9   :  { %970 = vsyncadd [#allocation3], 4294967168 }
 0x2da   :  { %634 = vsyncpa [#allocation3], 1 }

</bundles_post_ra>
